<compile_context>
chip_gen: v7x
topology: tpu7x:2x2x1
jax: 0.10.0
libtpu: 0.0.40
codegen_flags: <defaults>
</compile_context>

<pallas_src>
import math
import numpy as np
import jax
import jax.numpy as jnp
from jax.experimental import pallas as pl
from jax.experimental.pallas import tpu as pltpu

N_SLICES = 4   # config.N_SLICES is not given in the snippet; small deterministic choice
K2 = 5         # second conv: kernel 5, stride 5


def _fusion_kernel(u_ref, w_ref, b_ref, out_ref):
    """Whole problem in one step: ReLU + (C,25)@(25,L) matmul + bias.

    u_ref:   (25, L) upsampled 5x5 patches (pre-ReLU); batches + pad on lanes
    w_ref:   (C, 25) both convs folded into one effective weight
    b_ref:   (C, 1)  effective bias
    out_ref: (C, L)  channels-first output, lane-dense (L multiple of 128)
    """
    u = jnp.maximum(u_ref[...], 0.0)                                  # ReLU on VPU
    out_ref[...] = (jnp.dot(w_ref[...], u, preferred_element_type=jnp.float32)
                    + b_ref[...])


def _upsample_im2col_indices(B, H, W):
    """Trace-time (numpy) indices composing nearest-3D-upsample + 5x5/stride-5 im2col.

    Returns ROW, COL of shape (25, L) indexing into x1.reshape(B*H, W), plus the
    geometry (Hc, Wc, P, L).  Depth axis: Do = floor(2*0.5) = 1 with nearest
    index 0, i.e. only x1 survives (exactly as in the torch module).
    """
    u1, u2, u3 = (1.0 / 2.0, 224.0 * 5.0 / 50.0, 224.0 * 5.0 / 720.0)
    Do = int(math.floor(2 * u1))
    Ho = int(math.floor(H * u2))
    Wo = int(math.floor(W * u3))
    assert Do == 1  # depth-nearest keeps only x1

    # TODO(synk): uses floor(i/scale) (scale_factor semantics); if the reference
    #             torch build recomputes scales from sizes (floor(i*in/out)),
    #             the W-axis index map differs slightly.
    idx_h = np.minimum(np.floor(np.arange(Ho) * (1.0 / u2)).astype(np.int64), H - 1)
    idx_w = np.minimum(np.floor(np.arange(Wo) * (1.0 / u3)).astype(np.int64), W - 1)

    Hc = (Ho - K2) // K2 + 1
    Wc = (Wo - K2) // K2 + 1
    P = Hc * Wc
    KK = K2 * K2

    # source row/col for upsampled position (5*h0 + kh, 5*w0 + kw)
    src_r = idx_h[np.arange(Hc)[:, None] * K2 + np.arange(K2)[None, :]]   # (Hc, 5)
    src_c = idx_w[np.arange(Wc)[:, None] * K2 + np.arange(K2)[None, :]]   # (Wc, 5)
    # ROW[kh*5+kw, h0*Wc+w0] = src_r[h0, kh] ; COL[kh*5+kw, h0*Wc+w0] = src_c[w0, kw]
    ROW = np.broadcast_to(src_r.T[:, None, :, None], (K2, K2, Hc, Wc)).reshape(KK, P)
    COL = np.broadcast_to(src_c.T[None, :, None, :], (K2, K2, Hc, Wc)).reshape(KK, P)

    # fold batch onto the lane axis; pad lanes to a multiple of 128 (pad columns
    # point at element (0,0) -> finite values, sliced off after the kernel)
    L = ((B * P + 127) // 128) * 128
    ROW2 = np.zeros((KK, L), np.int32)
    COL2 = np.zeros((KK, L), np.int32)
    for b in range(B):
        ROW2[:, b * P:(b + 1) * P] = ROW + b * H      # index into (B*H, W)
        COL2[:, b * P:(b + 1) * P] = COL
    return ROW2, COL2, Hc, Wc, P, L


def fusion_forward(x1, x2, params):
    """x2 is accepted for interface parity; it is provably dead in the reference
    module (depth-axis nearest downsample selects only x1)."""
    del x2
    w1, b1, w2, b2 = params        # shapes: (C,1,1,1), (C,), (C,C,5,5), (C,)
    B, H, W = x1.shape
    C = N_SLICES
    KK = K2 * K2

    ROW, COL, Hc, Wc, P, L = _upsample_im2col_indices(B, H, W)

    # ---- glue (1 gather op): combined upsample + im2col, lane-dense on B*P ---
    u = x1.astype(jnp.float32).reshape(B * H, W)[ROW, COL]               # (25, L)

    # ---- fold Conv2d(1,C,1) into Conv2d(C,C,5,s=5): (C,25) weight + (C,) bias
    w1_vec = w1.reshape(C).astype(jnp.float32)                           # (Cin,)
    w2_r = w2.reshape(C, C, KK).astype(jnp.float32)                      # (Cout,Cin,25)
    w_eff = jnp.einsum('i,oik->ok', w1_vec, w2_r)                        # (Cout, 25)
    b_eff = b2.astype(jnp.float32) + jnp.einsum('i,oik->o',
                                                b1.astype(jnp.float32), w2_r)

    out_flat = pl.pallas_call(
        _fusion_kernel,
        out_shape=jax.ShapeDtypeStruct((C, L), jnp.float32),
        grid=(1,),
        in_specs=[
            pl.BlockSpec((KK, L), lambda i: (0, 0)),
            pl.BlockSpec((C, KK), lambda i: (0, 0)),
            pl.BlockSpec((C, 1), lambda i: (0, 0)),
        ],
        out_specs=pl.BlockSpec((C, L), lambda i: (0, 0)),
        compiler_params=pltpu.CompilerParams(dimension_semantics=("arbitrary",)),
    )(u, w_eff, b_eff[:, None])

    # ---- glue: final Rearrange 'b nC h w -> b 1 h w nC' (tiny output) --------
    out = out_flat[:, :B * P].reshape(C, B, Hc, Wc)
    return jnp.transpose(out, (1, 2, 3, 0))[:, None]                     # (B,1,Hc,Wc,C)


def _reference_unfused(x1, x2, params):
    """Pure-JAX reference of the un-fused module (full x1+x2 chain), for sanity."""
    w1, b1, w2, b2 = params
    B, H, W = x1.shape
    C = N_SLICES
    KK = K2 * K2
    src = jnp.maximum(jnp.stack([x1, x2], axis=1), 0.0)[:, None]         # (B,1,2,H,W)
    u1, u2, u3 = (1.0 / 2.0, 224.0 * 5.0 / 50.0, 224.0 * 5.0 / 720.0)
    D, Hy, Wz = 2, H, W
    Do, Ho, Wo = int(math.floor(D * u1)), int(math.floor(Hy * u2)), int(math.floor(Wz * u3))
    idx_d = np.minimum(np.floor(np.arange(Do) * (1.0 / u1)).astype(np.int64), D - 1)
    idx_h = np.minimum(np.floor(np.arange(Ho) * (1.0 / u2)).astype(np.int64), Hy - 1)
    idx_w = np.minimum(np.floor(np.arange(Wo) * (1.0 / u3)).astype(np.int64), Wz - 1)
    up = src[:, :, idx_d][:, :, :, idx_h][:, :, :, :, idx_w]             # (B,1,Do,Ho,Wo)
    img = up.reshape(B, Do, Ho, Wo)[:, 0]                                # (B,Ho,Wo)
    Hc, Wc = (Ho - K2) // K2 + 1, (Wo - K2) // K2 + 1
    P = Hc * Wc
    patches = img[:, :Hc * K2, :Wc * K2].reshape(B, Hc, K2, Wc, K2)
    patches = patches.transpose(0, 1, 3, 2, 4).reshape(B, P, KK)
    w2_k = jnp.transpose(w2, (1, 2, 3, 0)).reshape(C, KK, C)
    acc = jnp.zeros((B, P, C), jnp.float32)
    for ci in range(C):
        y1 = patches * w1.reshape(C)[ci] + b1[ci]
        acc = acc + jnp.einsum('bpk,kc->bpc', y1, w2_k[ci])
    acc = acc + b2
    return acc.reshape(B, Hc, Wc, C)[:, None]


if __name__ == "__main__":
    key = jax.random.PRNGKey(0)
    k1, k2, k3, k4, k5, k6 = jax.random.split(key, 6)

    B, H, W = 2, 5, 40                         # small shapes implied by the forward
    C = N_SLICES
    x1 = jax.random.normal(k1, (B, H, W), jnp.float32)
    x2 = jax.random.normal(k2, (B, H, W), jnp.float32)

    # deterministic synthetic parameters (shapes from the module's __init__)
    w1 = jax.random.normal(k3, (C, 1, 1, 1), jnp.float32) * 0.1   # Conv2d(1, C, 1)
    b1 = jax.random.normal(k4, (C,), jnp.float32) * 0.1
    w2 = jax.random.normal(k5, (C, C, K2, K2), jnp.float32) * 0.1  # Conv2d(C, C, 5, s=5)
    b2 = jax.random.normal(k6, (C,), jnp.float32) * 0.1

    params = (w1, b1, w2, b2)
    out = fusion_forward(x1, x2, params)
    out = jax.block_until_ready(out)

    # expected rank/layout: (B, 1, Hc, Wc, N_SLICES)
    assert out.ndim == 5 and out.shape[0] == B and out.shape[1] == 1 and out.shape[4] == C

    # numerical check against the un-fused pure-JAX path (differences are only
    # FP reassociation from folding the two convs: ~1e-6 level in f32); also
    # validates that dropping the x2 path is exact.
    ref = jax.block_until_ready(_reference_unfused(x1, x2, params))
    assert np.allclose(np.asarray(out), np.asarray(ref), rtol=1e-4, atol=1e-4)

    print("KERNEL_OK")
</pallas_src>

<mosaic_0001>
module attributes {stable_mosaic.version = 11 : i64} {
  func.func @_fusion_kernel(%arg0: i32, %arg1: memref<25x640xf32, #tpu.memory_space<vmem>>, %arg2: memref<4x25xf32, #tpu.memory_space<vmem>>, %arg3: memref<4x1xf32, #tpu.memory_space<vmem>>, %arg4: memref<4x640xf32, #tpu.memory_space<vmem>>) attributes {dimension_semantics = [#tpu.dimension_semantics<arbitrary>], iteration_bounds = array<i64: 1>, scalar_prefetch = 0 : i64, scratch_operands = 0 : i64, tpu.core_type = #tpu.core_type<tc>, window_params = [{pipeline_mode = #tpu.pipeline_mode<synchronous>, transform_indices = @transform_0, window_bounds = array<i64: 25, 640>}, {pipeline_mode = #tpu.pipeline_mode<synchronous>, transform_indices = @transform_1, window_bounds = array<i64: 4, 25>}, {pipeline_mode = #tpu.pipeline_mode<synchronous>, transform_indices = @transform_2, window_bounds = array<i64: 4, 1>}, {pipeline_mode = #tpu.pipeline_mode<synchronous>, transform_indices = @transform_3, window_bounds = array<i64: 4, 640>}]} {
    %c0 = arith.constant 0 : index
    %c0_0 = arith.constant 0 : index
    %0 = vector.load %arg1[%c0, %c0_0] : memref<25x640xf32, #tpu.memory_space<vmem>>, vector<25x640xf32>
    %cst = arith.constant 0.000000e+00 : f32
    %1 = vector.broadcast %cst : f32 to vector<25x640xf32>
    %2 = arith.maximumf %0, %1 : vector<25x640xf32>
    %c0_1 = arith.constant 0 : index
    %c0_2 = arith.constant 0 : index
    %3 = vector.load %arg2[%c0_1, %c0_2] : memref<4x25xf32, #tpu.memory_space<vmem>>, vector<4x25xf32>
    %cst_3 = arith.constant dense<0.000000e+00> : vector<4x640xf32>
    %4 = tpu.matmul %3, %2, %cst_3 {dimension_numbers = #tpu.dot_dimension_numbers<[1], [0], [0], [1], [0, 0, 1, 1], [], []>} : vector<4x25xf32>, vector<25x640xf32>, vector<4x640xf32> -> vector<4x640xf32>
    %c0_4 = arith.constant 0 : index
    %c0_5 = arith.constant 0 : index
    %5 = vector.load %arg3[%c0_4, %c0_5] : memref<4x1xf32, #tpu.memory_space<vmem>>, vector<4x1xf32>
    %6 = vector.broadcast %5 : vector<4x1xf32> to vector<4x640xf32>
    %7 = arith.addf %4, %6 : vector<4x640xf32>
    %c0_6 = arith.constant 0 : index
    %c0_7 = arith.constant 0 : index
    %8 = vector.load %arg4[%c0_6, %c0_7] : memref<4x640xf32, #tpu.memory_space<vmem>>, vector<4x640xf32>
    tpu.vector_store %arg4[%c0_6, %c0_7], %7 {strides = array<i32>} : memref<4x640xf32, #tpu.memory_space<vmem>>, vector<4x640xf32>,
    return
  }
  func.func @transform_0(%arg0: i32) -> (i32, i32) {
    %c0_i32 = arith.constant 0 : i32
    %c0_i32_0 = arith.constant 0 : i32
    %c0_i32_1 = arith.constant 0 : i32
    return %c0_i32, %c0_i32_0 : i32, i32
  }
  func.func @transform_1(%arg0: i32) -> (i32, i32) {
    %c0_i32 = arith.constant 0 : i32
    %c0_i32_0 = arith.constant 0 : i32
    %c0_i32_1 = arith.constant 0 : i32
    return %c0_i32, %c0_i32_0 : i32, i32
  }
  func.func @transform_2(%arg0: i32) -> (i32, i32) {
    %c0_i32 = arith.constant 0 : i32
    %c0_i32_0 = arith.constant 0 : i32
    %c0_i32_1 = arith.constant 0 : i32
    return %c0_i32, %c0_i32_0 : i32, i32
  }
  func.func @transform_3(%arg0: i32) -> (i32, i32) {
    %c0_i32 = arith.constant 0 : i32
    %c0_i32_0 = arith.constant 0 : i32
    %c0_i32_1 = arith.constant 0 : i32
    return %c0_i32, %c0_i32_0 : i32, i32
  }
}

</mosaic_0001>

<bundles_post_ra>
// kernel: tpu_custom_call.1
= control target key start
LH: loop header
LB: loop body
LE: loop exit
PB: predicated region body
PF: predicated region fallthrough
CT: control target
= control target key end

     0   :  { %8 = vsyncpa [#allocation3], 0  ;;  %s523_s0 = inlined_call_operand.hbm [shape: f32[25,640], index: 0, kind: input, shape index: {}]   ;;  %s524_s1 = inlined_call_operand.vmem [shape: f32[4,25], index: 1, kind: input, shape index: {}]   ;;  %s525_s2 = inlined_call_operand.vmem [shape: f32[4,1], index: 2, kind: input, shape index: {}]   ;;  %s526_s3 = inlined_call_operand.hbm [shape: f32[4,640], index: 3, kind: output, shape index: {}]  }
   0x1   :  { %9 = vsyncpa [#allocation4], 0  ;;  %s443_s12 = smov [#allocation2]   ;;  %s395_s16 = scalar_lea.hbm %s523_s0, 2560 }
   0x2   :  { %s15_s13 = sshll.u32 %s443_s12, 4  ;;  %p396_p0 = scmp.ne.s32.totalorder %s523_s0, %s395_s16  ;;  %s16_s13 = int_to_ptr.vmem [resolvable:$true] %s15_s13 }
   0x3   :  { %p399_p1 = scmp.lt.u32.totalorder %s395_s16, %s523_s0 }
   0x5   :  { %p401_p2 = pnand %p399_p1, %p396_p0 }
   0x7   :  { %404 = shalt.err (!%p401_p2)
}
   0x8   :  { %s405_s21 = scalar_lea.vmem %s16_s13, 2560  ;;  %p410_p4 = scmp.lt.s32.totalorder %s16_s13, %s16_s13 }
   0x9   :  { %p406_p3 = scmp.ne.s32.totalorder %s16_s13, %s405_s21  ;;  %p411_p5 = scmp.lt.s32.totalorder %s405_s21, %s405_s21 }
   0xb   :  { %p412_p6 = por %p411_p5, %p410_p4 }
   0xd   :  { %p413_p7 = pnand %p412_p6, %p406_p3 }
   0xf   :  { %416 = shalt.err (!%p413_p7)
}
  0x10   :  { %s444_s22 = smov 640   ;;  %s445_s23 = smov 40  }
  0x11   :  { %21 = dma.hbm_to_vmem [thread:$0]  %s523_s0, 2560, %s16_s13, [#allocation3], %s444_s22, %s444_s22, %s445_s23  }
  0x12   :  { %439 = dma.done.wait [#allocation3], 2560  }
  0x13   :  { %440 = vsyncadd [#allocation3], 4294964736  ;;  %v446_v0 = vmov 0.0   ;;  %v447_v1 = vmov 0   ;;  %v30_v2 = vld [vmem:[#allocation2 + $0x8] sm:$0xff]  ;;  %v35_v3 = vld [vmem:[#allocation2 + $0x30] sm:$0xff] }
  0x14   :  { %160 = vmatprep.mubr.f32.mxu0 %v446_v0  ;;  %231 = vmatprep.mubr.f32.mxu1 %v446_v0  ;;  %v29_v4 = vld [vmem:[#allocation2] sm:$0xff]  ;;  %vm80_vm0 = vcmask 1040384   ;;  %v50_v5 = vmax.f32 %v30_v2, 0.0  ;;  %v55_v6 = vmax.f32 %v35_v3, 0.0  ;;  %v34_v7 = vld [vmem:[#allocation2 + $0x28] sm:$0xff]  ;;  %v40_v9 = vld [vmem:[#allocation2 + $0x58] sm:$0xff] }
  0x15   :  { %394 = vset.pattern.permute.xlu0 %v447_v1  ;;  %v49_v8 = vmax.f32 %v29_v4, 0.0  ;;  %v32_v10 = vld [vmem:[#allocation2 + $0x18] sm:$0xff]  ;;  %v54_v11 = vmax.f32 %v34_v7, 0.0  ;;  %v45_v12 = vld [vmem:[#allocation2 + $0x80] sm:$0x1]  ;;  %v60_v13 = vmax.f32 %v40_v9, 0.0 }
  0x16   :  { %v37_v14 = vld [vmem:[#allocation2 + $0x40] sm:$0xff]  ;;  %v52_v15 = vmax.f32 %v32_v10, 0.0  ;;  %v358_v16 = vpack.c.bf16 %v55_v6, %v50_v5  ;;  %v65_v17 = vmax.f32 %v45_v12, 0.0  ;;  %v39_v19 = vld [vmem:[#allocation2 + $0x50] sm:$0xff]  ;;  %v44_v20 = vld [vmem:[#allocation2 + $0x78] sm:$0x1] }
  0x17   :  { %v57_v18 = vmax.f32 %v37_v14, 0.0  ;;  %v31_v21 = vld [vmem:[#allocation2 + $0x10] sm:$0xff]  ;;  %v360_v22 = vpack.c.bf16 %v54_v11, %v49_v8  ;;  %vm448_vm1 = vmmov 1   ;;  %v59_v24 = vmax.f32 %v39_v19, 0.0  ;;  %v36_v26 = vld [vmem:[#allocation2 + $0x38] sm:$0xff]  ;;  %v42_v31 = vld [vmem:[#allocation2 + $0x68] sm:$0xff] }
  0x18   :  { %vm487_vm2 = vmpackc.low %vm80_vm0, %vm448_vm1  ;;  %v64_v25 = vmax.f32 %v44_v20, 0.0  ;;  %v51_v27 = vmax.f32 %v31_v21, 0.0  ;;  %359 = vmatprep.subr.bf16.mxu0 %v358_v16  ;;  %v362_v28 = vpack.c.bf16 %v65_v17, %v60_v13  ;;  %v56_v30 = vmax.f32 %v36_v26, 0.0  ;;  %v47_v32 = vld [vmem:[#allocation2 + $0x90] sm:$0x1]  ;;  %v41_v33 = vld [vmem:[#allocation2 + $0x60] sm:$0xff] }
  0x19   :  { %v368_v29 = vpack.c.bf16 %v57_v18, %v52_v15  ;;  %361 = vmatpush1.bf16.msra.mxu0 %v360_v22  ;;  %v62_v35 = vmax.f32 %v42_v31, 0.0  ;;  %v67_v36 = vmax.f32 %v47_v32, 0.0  ;;  %v46_v37 = vld [vmem:[#allocation2 + $0x88] sm:$0x1]  ;;  %v61_v38 = vmax.f32 %v41_v33, 0.0  ;;  %v33_v39 = vld [vmem:[#allocation2 + $0x20] sm:$0xff] }
  0x1a   :  { %v365_v34 = vpack.c.bf16 %v64_v25, %v59_v24  ;;  %364 = vmatprep.subr.msk.bf16.mxu0 %vm487_vm2, %v362_v28  ;;  %v370_v40 = vpack.c.bf16 %v56_v30, %v51_v27  ;;  %v66_v41 = vmax.f32 %v46_v37, 0.0  ;;  %v38_v42 = vld [vmem:[#allocation2 + $0x48] sm:$0xff]  ;;  %v53_v43 = vmax.f32 %v33_v39, 0.0  ;;  %v43_v44 = vld [vmem:[#allocation2 + $0x70] sm:$0xff]  ;;  %v48_v45 = vld [vmem:[#allocation2 + $0x98] sm:$0x1] }
  0x1b   :  { %369 = vmatprep.subr.bf16.mxu1 %v368_v29  ;;  %v372_v46 = vpack.c.bf16 %v67_v36, %v62_v35  ;;  %v58_v47 = vmax.f32 %v38_v42, 0.0  ;;  %v70_v48 = vld [vmem:[%s525_s2] sm:$0xf]  ;;  %vm76_vm3 = vcmask 203776   ;;  %v63_v52 = vmax.f32 %v43_v44, 0.0 }
  0x1c   :  { %371 = vmatpush1.bf16.msra.mxu1 %v370_v40  ;;  %v375_v49 = vpack.c.bf16 %v66_v41, %v61_v38  ;;  %73 = vperm.xlu0 %394, %v70_v48   ;;  %v69_v50 = vld [vmem:[%s524_s1] sm:$0xf]  ;;  %v68_v53 = vmax.f32 %v48_v45, 0.0  ;;  %v449_v54 = vmov 0.0|0.0   ;;  %vm450_vm4 = vmmov 0   ;;  %s451_s1 = smov [#allocation5]  }
  0x1d   :  { %367 = vmatpush1.bf16.msk.msra.mxu0 %vm487_vm2, %v365_v34  ;;  %374 = vmatprep.subr.msk.bf16.mxu1 %vm487_vm2, %v372_v46  ;;  %v379_v51 = vpack.c.bf16 %v58_v47, %v53_v43  ;;  %s325_s2 = sshll.u32 %s451_s1, 4  ;;  %s326_s2 = int_to_ptr.vmem [resolvable:$true] %s325_s2 }
  0x1e   :  { %378 = vmatprep.subr.bf16.mxu0 %v449_v54  ;;  %v382_v55 = vpack.c.bf16 %v68_v53, %v63_v52  ;;  %s417_s29 = scalar_lea.vmem %s326_s2, 320  ;;  %p422_p9 = scmp.lt.s32.totalorder %s326_s2, %s326_s2 }
  0x1f   :  { %p418_p8 = scmp.ne.s32.totalorder %s326_s2, %s417_s29  ;;  %p423_p10 = scmp.lt.s32.totalorder %s417_s29, %s417_s29 }
  0x20   :  { %336 = vmatmul.mubr.msk.f32.vlgmr.msra.gmra.mrb[0].mxu0 %vm76_vm3, %v69_v50  ;;  %377 = vmatpush1.bf16.msk.msra.mxu1 %vm487_vm2, %v375_v49 }
  0x21   :  { %380 = vmatpush3.bf16.msra.mxu0 %v379_v51  ;;  %355 = vmatprep.mubr.msk.f32.mxu0 %vm450_vm4, %v446_v0  ;;  %p424_p11 = por %p423_p10, %p422_p9 }
  0x22   :  { %381 = vmatprep.subr.bf16.mxu0 %v449_v54 }
  0x23   :  { %339 = vmatmul.mubr.msk.f32.vlgmr.msra.gmra.mrb[0].mxu1 %vm76_vm3, %v69_v50  ;;  %p425_p12 = pnand %p424_p11, %p418_p8 }
  0x25   :  { %384 = vmatpush3.bf16.msk.msra.mxu0 %vm487_vm2, %v382_v55 }
  0x28   :  { %356 = vmatmul.mubr.msk.f32.vlgmr.msra.gmra.mrb[2].mxu0 %vm76_vm3, %v69_v50 }
  0x9b   :  { %v74_v56 = vpop.permute.xlu0 %73 }
  0xf3   :  { %v162_v57 = vpop.f32.mrb[0].mxu0 }
  0xf4   :  { %v163_v58 = vadd.f32 %v162_v57, %v74_v56  ;;  %v164_v59 = vpop.f32.mrb[1].mxu0 }
  0xf5   :  { %v165_v60 = vadd.f32 %v164_v59, %v74_v56 }
  0xf6   :  { %v233_v61 = vpop.f32.mrb[0].mxu1 }
  0xf7   :  { %v312_v62 = vcombine.low %v163_v58, %v165_v60  ;;  %v234_v63 = vadd.f32 %v233_v61, %v74_v56  ;;  %v235_v1 = vpop.f32.mrb[1].mxu1 }
  0xf8   :  { %v236_v2 = vadd.f32 %v235_v1, %v74_v56 }
  0xf9   :  { %316 = vst [vmem:[#allocation5] sm:$0xff] %v312_v62 }
  0xfa   :  { %v313_v0 = vcombine.low %v234_v63, %v236_v2 }
  0xfb   :  { %v304_v3 = vpop.f32.mrb[2].mxu0 }
  0xfc   :  { %317 = vst [vmem:[#allocation5 + $0x8] sm:$0xff] %v313_v0  ;;  %v305_v4 = vadd.f32 %v304_v3, %v74_v56  ;;  %v357_v5 = vpop.f32.mrb[3].mxu0 }
  0xfe   :  { %318 = vst [vmem:[#allocation5 + $0x10] sm:$0xf] %v305_v4 }
  0xff   :  { %428 = shalt.err (!%p425_p12)
}
 0x100   :  { %s429_s5 = scalar_lea.hbm %s526_s3, 320 }
 0x101   :  { %p430_p13 = scmp.ne.s32.totalorder %s526_s3, %s429_s5  ;;  %p433_p0 = scmp.lt.u32.totalorder %s429_s5, %s526_s3 }
 0x103   :  { %p435_p1 = pnand %p433_p0, %p430_p13 }
 0x105   :  { %438 = shalt.err (!%p435_p1)
}
 0x106   :  { %328 = dma.vmem_to_hbm [thread:$0]  %s326_s2, 320, %s526_s3, [#allocation4]  }
 0x107   :  { %441 = dma.done.wait [#allocation4], 320  }
 0x108   :  { %442 = vsyncadd [#allocation4], 4294966976 }
 0x109   :  { %332 = vsyncpa [#allocation3], 1 }
 0x10a   :  { %333 = vsyncpa [#allocation4], 1 }

</bundles_post_ra>
